<compile_context>
chip_gen: v5e
topology: v5e:2x2
jax: 0.10.0
libtpu: 0.0.40
codegen_flags: <defaults>
</compile_context>

<pallas_src>
import functools

import jax
import jax.numpy as jnp
from jax.experimental import pallas as pl
from jax.experimental.pallas import tpu as pltpu

_TM_CANDIDATES = (1024, 512, 256, 128, 64, 32, 16, 8)
_PADL = 16          # aligned interior column offset inside the conv2 VMEM scratch

_VMEM_LIMIT_CACHE = None


def _vmem_limit():
    """Generation-aware VMEM limit: ~75% of physical capacity, 48 MiB fallback."""
    global _VMEM_LIMIT_CACHE
    if _VMEM_LIMIT_CACHE is None:
        limit = 48 * 1024 * 1024
        try:
            info = pltpu.get_tpu_info()
            cap = getattr(info, "vmem_capacity_bytes", None)
            if cap:
                limit = int(cap) * 3 // 4
        except Exception:
            pass
        _VMEM_LIMIT_CACHE = limit
    return _VMEM_LIMIT_CACHE


def _pick_m_tile(M, row_bytes, budget):
    """Largest M-tile that divides M, fits the VMEM budget, and (if possible)
    leaves >= 2 grid blocks so v7x's two TensorCores both get work."""
    divisors = [t for t in _TM_CANDIDATES if M % t == 0]
    if not divisors:
        # TODO(synk): pad / mask ragged M instead of one big unaligned block.
        return M
    fits = [t for t in divisors if t * row_bytes <= budget]
    pool = fits if fits else divisors[-1:]
    multi = [t for t in pool if M // t >= 2]
    return multi[0] if multi else pool[0]


def _bn_scale_shift(mean, var, gamma, beta, eps):
    scale = gamma * jax.lax.rsqrt(var + eps)
    shift = beta - mean * scale
    return scale, shift


# ---------------------------------------------------------------------------
# 1x1 conv as a matmul with a resident weight, optional fused BN+ReLU prologue
# (previous stage's BatchNorm) and a fused BN-statistics epilogue.
# ---------------------------------------------------------------------------
def _mm_stats_kernel(*refs, fuse_prologue):
    if fuse_prologue:
        a_ref, b_ref, sc_ref, sh_ref, o_ref, s_ref, ss_ref = refs
    else:
        a_ref, b_ref, o_ref, s_ref, ss_ref = refs

    a = a_ref[...]
    if fuse_prologue:
        # previous stage's BatchNorm (per-channel scale/shift) + ReLU, in f32
        a = jnp.maximum(a.astype(jnp.float32) * sc_ref[...] + sh_ref[...], 0.0)
    a = a.astype(jnp.bfloat16)

    # Weight block is K-resident (constant index_map) -> fetched from HBM once.
    y = jnp.dot(a, b_ref[...], preferred_element_type=jnp.float32)

    o_ref[...] = y.astype(o_ref.dtype)
    # per-block column sums for the *next* BatchNorm (XLU work, overlaps MXU)
    s_ref[...] = jnp.sum(y, axis=0, keepdims=True)[None]
    ss_ref[...] = jnp.sum(y * y, axis=0, keepdims=True)[None]


def matmul_stats(a, b, scale=None, shift=None, out_dtype=jnp.float32):
    """y = [relu(a*scale + shift)] @ b, plus per-column mean/var of y.

    a: (M, K) f32/bf16; b: (K, N) bf16 (kept resident in VMEM);
    scale/shift: optional (1, K) f32 (previous stage's BN+ReLU prologue).
    Returns (y (M, N) out_dtype, mean f32 (1, N), var f32 (1, N)).
    """
    M, K = a.shape
    K2, N = b.shape
    assert K == K2
    fuse = scale is not None

    a_bytes = jnp.dtype(a.dtype).itemsize
    o_bytes = jnp.dtype(out_dtype).itemsize
    # working-set estimate per M row: 2x A (double buffer) + 2x out + f32 dot result
    row_bytes = 2 * K * a_bytes + 2 * N * o_bytes + N * 4
    budget = max(int(_vmem_limit() * 0.6) - 2 * K * N * 2, 1)
    tm = _pick_m_tile(M, row_bytes, budget)
    n_m = M // tm

    kern = functools.partial(_mm_stats_kernel, fuse_prologue=fuse)

    a_spec = pl.BlockSpec((tm, K), lambda i: (i, 0))
    b_spec = pl.BlockSpec((K, N), lambda i: (0, 0))        # resident weight
    vec_spec = pl.BlockSpec((1, K), lambda i: (0, 0))
    o_spec = pl.BlockSpec((tm, N), lambda i: (i, 0))
    stat_spec = pl.BlockSpec((1, 1, N), lambda i: (i, 0, 0))

    in_specs = [a_spec, b_spec]
    args = [a, b]
    if fuse:
        in_specs += [vec_spec, vec_spec]
        args += [scale, shift]

    y, s, ss = pl.pallas_call(
        kern,
        out_shape=(jax.ShapeDtypeStruct((M, N), out_dtype),
                   jax.ShapeDtypeStruct((n_m, 1, N), jnp.float32),
                   jax.ShapeDtypeStruct((n_m, 1, N), jnp.float32)),
        grid_spec=pltpu.PrefetchScalarGridSpec(
            num_scalar_prefetch=0,
            grid=(n_m,),
            in_specs=in_specs,
            out_specs=(o_spec, stat_spec, stat_spec),
        ),
        compiler_params=pltpu.CompilerParams(
            dimension_semantics=("parallel",),
            vmem_limit_bytes=_vmem_limit()),
    )(*args)

    # tiny cross-block combine in the wrapper keeps the grid purely parallel
    s = s.reshape(n_m, N).sum(axis=0)
    ss = ss.reshape(n_m, N).sum(axis=0)
    mean = s / M
    # TODO(synk): Welford/shifted combine if single-pass E[x^2]-E[x]^2 loses
    # too many bits at very large M.
    var = jnp.maximum(ss / M - mean * mean, 0.0)
    return y, mean[None, :], var[None, :]


# ---------------------------------------------------------------------------
# conv2: 3x3 conv as 9 accumulating shifted matmuls (no HBM im2col),
# BN1(affine=False)+ReLU fused as a prologue, BN2 statistics fused as epilogue.
# One grid step == one batch image (whole image resident in VMEM; CIFAR-scale).
# ---------------------------------------------------------------------------
def _conv3x3_kernel(x_ref, w_ref, sc_ref, sh_ref, o_ref, s_ref, ss_ref,
                    pad_ref, acc_ref, *, H, W, C, Cout, d, padl):
    # zero the whole padded scratch (the halo stays zero; interior overwritten)
    pad_ref[...] = jnp.zeros_like(pad_ref)

    # BN1 (affine=False) + ReLU prologue on the conv1 output tile (f32 math)
    y = x_ref[...].reshape(H * W, C).astype(jnp.float32)
    a = jnp.maximum(y * sc_ref[...] + sh_ref[...], 0.0)
    pad_ref[d:d + H, padl:padl + W, :] = a.reshape(H, W, C)

    # 3x3 conv = 9 shifted matmuls, f32 accumulation in a VMEM scratch
    for ki in range(3):
        for kj in range(3):
            idx = ki * 3 + kj
            r0 = ki * d
            c0 = padl + (kj - 1) * d
            tap = pad_ref[r0:r0 + H, c0:c0 + W, :].reshape(H * W, C)
            contrib = jnp.dot(tap.astype(jnp.bfloat16), w_ref[idx],
                              preferred_element_type=jnp.float32)
            if idx == 0:
                acc_ref[...] = contrib
            else:
                acc_ref[...] += contrib

    yo = acc_ref[...]
    o_ref[...] = yo.reshape(1, H, W, Cout).astype(o_ref.dtype)
    s_ref[...] = jnp.sum(yo, axis=0, keepdims=True)[None]
    ss_ref[...] = jnp.sum(yo * yo, axis=0, keepdims=True)[None]


def conv3x3_bn_stats(y1_nhwc, w2_taps, sc1, sh1, dilation):
    """3x3 conv (stride 1, padding=dilation) of relu(bn1(y1)), plus BN2 stats.

    y1_nhwc: (N, H, W, C) bf16 (raw conv1 output); w2_taps: (9, C, Cout) bf16;
    sc1/sh1: (1, C) f32 (BN1 scale/shift).
    Returns (y2 (N, H, W, Cout) bf16, mean (1, Cout), var (1, Cout)).
    """
    N, H, W, C = y1_nhwc.shape
    _, _, Cout = w2_taps.shape
    d = dilation
    assert d <= _PADL, "dilation too large for the padded scratch layout"

    kern = functools.partial(_conv3x3_kernel, H=H, W=W, C=C, Cout=Cout,
                             d=d, padl=_PADL)

    # TODO(synk): band rows (with a halo) instead of whole images per grid step
    # when H*W*C no longer fits comfortably in VMEM (fine for CIFAR shapes).
    y2, s, ss = pl.pallas_call(
        kern,
        out_shape=(jax.ShapeDtypeStruct((N, H, W, Cout), jnp.bfloat16),
                   jax.ShapeDtypeStruct((N, 1, Cout), jnp.float32),
                   jax.ShapeDtypeStruct((N, 1, Cout), jnp.float32)),
        grid_spec=pltpu.PrefetchScalarGridSpec(
            num_scalar_prefetch=0,
            grid=(N,),
            in_specs=[pl.BlockSpec((1, H, W, C), lambda b: (b, 0, 0, 0)),
                      pl.BlockSpec((9, C, Cout), lambda b: (0, 0, 0)),   # resident
                      pl.BlockSpec((1, C), lambda b: (0, 0)),
                      pl.BlockSpec((1, C), lambda b: (0, 0))],
            out_specs=(pl.BlockSpec((1, H, W, Cout), lambda b: (b, 0, 0, 0)),
                       pl.BlockSpec((1, 1, Cout), lambda b: (b, 0, 0)),
                       pl.BlockSpec((1, 1, Cout), lambda b: (b, 0, 0))),
            scratch_shapes=[
                pltpu.VMEM((H + 2 * d, W + 2 * _PADL, C), jnp.float32),  # padded act
                pltpu.VMEM((H * W, Cout), jnp.float32),                  # f32 acc
            ],
        ),
        compiler_params=pltpu.CompilerParams(
            dimension_semantics=("parallel",),
            vmem_limit_bytes=_vmem_limit()),
    )(y1_nhwc, w2_taps, sc1, sh1)

    M = N * H * W
    s = s.reshape(N, Cout).sum(axis=0)
    ss = ss.reshape(N, Cout).sum(axis=0)
    mean = s / M
    var = jnp.maximum(ss / M - mean * mean, 0.0)
    return y2, mean[None, :], var[None, :]


# ---------------------------------------------------------------------------
# final BN3 apply + residual add + ReLU, with lane-folding for C < 128
# ---------------------------------------------------------------------------
def _bn_res_relu_kernel(x_ref, sc_ref, sh_ref, r_ref, o_ref):
    y = x_ref[...] * sc_ref[...] + sh_ref[...] + r_ref[...]
    o_ref[...] = jnp.maximum(y, 0.0).astype(o_ref.dtype)


def bn_residual_relu(x, scale, shift, residual, out_dtype=jnp.float32):
    M, C = x.shape
    # lane-densify: fold rows into lanes so the output last dim is >= 128
    f = 1
    if C < 128 and 128 % C == 0:
        f = 128 // C
        while f > 1 and M % f:
            f //= 2
    Mf, Cf = M // f, C * f
    xf = x.reshape(Mf, Cf)
    rf = residual.reshape(Mf, Cf)
    scf = jnp.tile(scale, (1, f))
    shf = jnp.tile(shift, (1, f))

    row_bytes = Cf * (2 * 4 + 2 * 4 + 2 * jnp.dtype(out_dtype).itemsize)
    tm = _pick_m_tile(Mf, row_bytes, max(int(_vmem_limit() * 0.6), 1))

    row_spec = pl.BlockSpec((tm, Cf), lambda i: (i, 0))
    vec_spec = pl.BlockSpec((1, Cf), lambda i: (0, 0))

    out = pl.pallas_call(
        _bn_res_relu_kernel,
        out_shape=jax.ShapeDtypeStruct((Mf, Cf), out_dtype),
        grid_spec=pltpu.PrefetchScalarGridSpec(
            num_scalar_prefetch=0,
            grid=(Mf // tm,),
            in_specs=[row_spec, vec_spec, vec_spec, row_spec],
            out_specs=row_spec,
        ),
        compiler_params=pltpu.CompilerParams(
            dimension_semantics=("parallel",),
            vmem_limit_bytes=_vmem_limit()),
    )(xf, scf, shf, rf)
    return out.reshape(M, C)


# ---------------------------------------------------------------------------
# Bottleneck forward
# ---------------------------------------------------------------------------
def bottleneck_forward(x_nchw, params, stride=1, dilation=1, eps=1e-5):
    # downsample=None => identity shortcut: stride == 1, inplanes == planes*4
    assert stride == 1, "downsample=None requires stride == 1"
    # TODO(synk): fold the NCHW<->NHWC boundary transposes into the kernels
    # (index_map gather / lane-dense out_spec) or expose an NHWC interface.
    x = jnp.transpose(x_nchw, (0, 2, 3, 1)).astype(jnp.float32)        # NHWC
    N, H, W, Cin = x.shape
    assert Cin == params["w3"].shape[1], (
        "downsample=None requires inplanes == planes * expansion")

    identity = x.reshape(N * H * W, Cin)

    # stage 1: conv1 (1x1) -> bf16 y1, BN1 batch statistics fused in the epilogue
    y1, m1, v1 = matmul_stats(identity, params["w1"], out_dtype=jnp.bfloat16)
    width = y1.shape[1]

    # stage 2: conv2 (3x3) with BN1(affine=False)+ReLU fused as a prologue and
    # BN2 statistics fused in the epilogue (no im2col, no separate BN1 pass)
    sc1 = jax.lax.rsqrt(v1 + eps)
    sh1 = -m1 * sc1
    y2, m2, v2 = conv3x3_bn_stats(y1.reshape(N, H, W, width), params["w2"],
                                  sc1, sh1, dilation)

    # stage 3: conv3 (1x1) with BN2+ReLU fused as a prologue, BN3 stats fused
    sc2, sh2 = _bn_scale_shift(m2, v2, params["g2"], params["b2"], eps)
    y3, m3, v3 = matmul_stats(y2.reshape(N * H * W, width), params["w3"],
                              scale=sc2, shift=sh2, out_dtype=jnp.float32)

    # BN3 + residual add + ReLU (single lane-dense elementwise pass)
    sc3, sh3 = _bn_scale_shift(m3, v3, params["g3"], params["b3"], eps)
    out = bn_residual_relu(y3, sc3, sh3, identity)

    Cout = out.shape[1]
    return out.reshape(N, H, W, Cout).transpose(0, 3, 1, 2)            # NCHW


# ---------------------------------------------------------------------------
# pure-JAX reference (mirrors the kernel's bf16 cast points)
# ---------------------------------------------------------------------------
def _ref_forward(x_nchw, params, stride, dilation, eps=1e-5):
    x = jnp.transpose(x_nchw, (0, 2, 3, 1)).astype(jnp.float32)
    N, H, W, Cin = x.shape
    width = params["w1"].shape[1]
    cout = params["w3"].shape[1]

    def conv(h_bf16, w_hwio, s, d, pad):
        return jax.lax.conv_general_dilated(
            h_bf16, w_hwio, window_strides=(s, s),
            padding=[(pad, pad), (pad, pad)], rhs_dilation=(d, d),
            dimension_numbers=("NHWC", "HWIO", "NHWC"),
            preferred_element_type=jnp.float32)

    def stats(y):
        m = jnp.mean(y, axis=(0, 1, 2), keepdims=True)
        v = jnp.mean((y - m) ** 2, axis=(0, 1, 2), keepdims=True)
        return m, v

    w1 = params["w1"].reshape(1, 1, Cin, width)
    w2 = params["w2"].reshape(3, 3, width, width)
    w3 = params["w3"].reshape(1, 1, width, cout)

    y1 = conv(x.astype(jnp.bfloat16), w1, 1, 1, 0)
    m1, v1 = stats(y1)
    a1 = jax.nn.relu((y1.astype(jnp.bfloat16).astype(jnp.float32) - m1)
                     * jax.lax.rsqrt(v1 + eps))

    y2 = conv(a1.astype(jnp.bfloat16), w2, stride, dilation, dilation)
    m2, v2 = stats(y2)
    a2 = jax.nn.relu((y2.astype(jnp.bfloat16).astype(jnp.float32) - m2)
                     * jax.lax.rsqrt(v2 + eps) * params["g2"][0] + params["b2"][0])

    y3 = conv(a2.astype(jnp.bfloat16), w3, 1, 1, 0)
    m3, v3 = stats(y3)
    h = (y3 - m3) * jax.lax.rsqrt(v3 + eps) * params["g3"][0] + params["b3"][0]
    out = jax.nn.relu(h + x)
    return out.transpose(0, 3, 1, 2)


# ---------------------------------------------------------------------------
# parameter construction (PyTorch layouts -> matmul / per-tap layouts)
# ---------------------------------------------------------------------------
def make_params(key, inplanes, planes, base_width=64, groups=1):
    width = int(planes * (base_width / 64.0)) * groups
    expansion = 4
    k1, k2, k3 = jax.random.split(key, 3)
    # PyTorch conv weights are (out, in, kh, kw)
    W1 = jax.random.normal(k1, (width, inplanes, 1, 1), jnp.float32) * 0.1
    W2 = jax.random.normal(k2, (width, width, 3, 3), jnp.float32) * 0.1
    W3 = jax.random.normal(k3, (planes * expansion, width, 1, 1), jnp.float32) * 0.1
    params = {
        # bf16 weights: native MXU dtype, halves weight DMA traffic
        "w1": W1[:, :, 0, 0].T.astype(jnp.bfloat16),                       # (Cin, width)
        "w2": W2.transpose(2, 3, 1, 0).reshape(9, width, width).astype(
            jnp.bfloat16),                                                 # (9, C, Cout) per-tap
        "w3": W3[:, :, 0, 0].T.astype(jnp.bfloat16),                       # (width, 4*planes)
        # BatchNorm affine params at their PyTorch init (ones / zeros)
        "g2": jnp.ones((1, width), jnp.float32),
        "b2": jnp.zeros((1, width), jnp.float32),
        "g3": jnp.ones((1, planes * expansion), jnp.float32),
        "b3": jnp.zeros((1, planes * expansion), jnp.float32),
    }
    return params


if __name__ == "__main__":
    key = jax.random.PRNGKey(0)
    kx, kp = jax.random.split(key)

    batch, inplanes, planes, H, W = 2, 16, 4, 16, 16    # inplanes == planes*4
    stride, dilation = 1, 1

    x = jax.random.normal(kx, (batch, inplanes, H, W), jnp.float32)
    params = make_params(kp, inplanes, planes)

    out = bottleneck_forward(x, params, stride=stride, dilation=dilation)
    out = jax.block_until_ready(out)

    ref = _ref_forward(x, params, stride, dilation)
    assert out.shape == (batch, planes * 4, H, W), out.shape
    err = float(jnp.max(jnp.abs(out - ref)))
    assert err < 3e-2, err   # same bf16 cast points as the reference

    print("KERNEL_OK")
</pallas_src>

<mosaic_0001>
module attributes {stable_mosaic.version = 11 : i64} {
  func.func @_mm_stats_kernel(%arg0: i32, %arg1: memref<256x16xf32, #tpu.memory_space<vmem>>, %arg2: memref<16x4xbf16, #tpu.memory_space<vmem>>, %arg3: memref<256x4xbf16, #tpu.memory_space<vmem>>, %arg4: memref<1x1x4xf32, #tpu.memory_space<vmem>>, %arg5: memref<1x1x4xf32, #tpu.memory_space<vmem>>) attributes {dimension_semantics = [#tpu.dimension_semantics<parallel>], iteration_bounds = array<i64: 2>, scalar_prefetch = 0 : i64, scratch_operands = 0 : i64, tpu.core_type = #tpu.core_type<tc>, window_params = [{transform_indices = @transform_0, window_bounds = array<i64: 256, 16>}, {pipeline_mode = #tpu.pipeline_mode<synchronous>, transform_indices = @transform_1, window_bounds = array<i64: 16, 4>}, {transform_indices = @transform_2, window_bounds = array<i64: 256, 4>}, {transform_indices = @transform_3, window_bounds = array<i64: 1, 1, 4>}, {transform_indices = @transform_4, window_bounds = array<i64: 1, 1, 4>}]} {
    %c0 = arith.constant 0 : index
    %c0_0 = arith.constant 0 : index
    %0 = vector.load %arg1[%c0, %c0_0] : memref<256x16xf32, #tpu.memory_space<vmem>>, vector<256x16xf32>
    %1 = arith.truncf %0 : vector<256x16xf32> to vector<256x16xbf16>
    %c0_1 = arith.constant 0 : index
    %c0_2 = arith.constant 0 : index
    %2 = vector.load %arg2[%c0_1, %c0_2] : memref<16x4xbf16, #tpu.memory_space<vmem>>, vector<16x4xbf16>
    %cst = arith.constant dense<0.000000e+00> : vector<256x4xf32>
    %3 = tpu.matmul %1, %2, %cst {dimension_numbers = #tpu.dot_dimension_numbers<[1], [0], [0], [1], [0, 0, 1, 1], [], []>} : vector<256x16xbf16>, vector<16x4xbf16>, vector<256x4xf32> -> vector<256x4xf32>
    %4 = arith.truncf %3 : vector<256x4xf32> to vector<256x4xbf16>
    %c0_3 = arith.constant 0 : index
    %c0_4 = arith.constant 0 : index
    %5 = vector.load %arg3[%c0_3, %c0_4] : memref<256x4xbf16, #tpu.memory_space<vmem>>, vector<256x4xbf16>
    tpu.vector_store %arg3[%c0_3, %c0_4], %4 {strides = array<i32>} : memref<256x4xbf16, #tpu.memory_space<vmem>>, vector<256x4xbf16>,
    %cst_5 = arith.constant dense<0.000000e+00> : vector<4xf32>
    %6 = vector.multi_reduction <add>, %3, %cst_5 [0] : vector<256x4xf32> to vector<4xf32>
    %7 = vector.shape_cast %6 : vector<4xf32> to vector<1x4xf32>
    %8 = vector.shape_cast %7 : vector<1x4xf32> to vector<1x1x4xf32>
    %c0_6 = arith.constant 0 : index
    %c0_7 = arith.constant 0 : index
    %c0_8 = arith.constant 0 : index
    %9 = vector.load %arg4[%c0_6, %c0_7, %c0_8] : memref<1x1x4xf32, #tpu.memory_space<vmem>>, vector<1x1x4xf32>
    tpu.vector_store %arg4[%c0_6, %c0_7, %c0_8], %8 {strides = array<i32>} : memref<1x1x4xf32, #tpu.memory_space<vmem>>, vector<1x1x4xf32>,
    %10 = arith.mulf %3, %3 : vector<256x4xf32>
    %cst_9 = arith.constant dense<0.000000e+00> : vector<4xf32>
    %11 = vector.multi_reduction <add>, %10, %cst_9 [0] : vector<256x4xf32> to vector<4xf32>
    %12 = vector.shape_cast %11 : vector<4xf32> to vector<1x4xf32>
    %13 = vector.shape_cast %12 : vector<1x4xf32> to vector<1x1x4xf32>
    %c0_10 = arith.constant 0 : index
    %c0_11 = arith.constant 0 : index
    %c0_12 = arith.constant 0 : index
    %14 = vector.load %arg5[%c0_10, %c0_11, %c0_12] : memref<1x1x4xf32, #tpu.memory_space<vmem>>, vector<1x1x4xf32>
    tpu.vector_store %arg5[%c0_10, %c0_11, %c0_12], %13 {strides = array<i32>} : memref<1x1x4xf32, #tpu.memory_space<vmem>>, vector<1x1x4xf32>,
    return
  }
  func.func @transform_0(%arg0: i32) -> (i32, i32) {
    %c0_i32 = arith.constant 0 : i32
    %c0_i32_0 = arith.constant 0 : i32
    return %arg0, %c0_i32 : i32, i32
  }
  func.func @transform_1(%arg0: i32) -> (i32, i32) {
    %c0_i32 = arith.constant 0 : i32
    %c0_i32_0 = arith.constant 0 : i32
    %c0_i32_1 = arith.constant 0 : i32
    return %c0_i32, %c0_i32_0 : i32, i32
  }
  func.func @transform_2(%arg0: i32) -> (i32, i32) {
    %c0_i32 = arith.constant 0 : i32
    %c0_i32_0 = arith.constant 0 : i32
    return %arg0, %c0_i32 : i32, i32
  }
  func.func @transform_3(%arg0: i32) -> (i32, i32, i32) {
    %c0_i32 = arith.constant 0 : i32
    %c0_i32_0 = arith.constant 0 : i32
    %c0_i32_1 = arith.constant 0 : i32
    return %arg0, %c0_i32, %c0_i32_0 : i32, i32, i32
  }
  func.func @transform_4(%arg0: i32) -> (i32, i32, i32) {
    %c0_i32 = arith.constant 0 : i32
    %c0_i32_0 = arith.constant 0 : i32
    %c0_i32_1 = arith.constant 0 : i32
    return %arg0, %c0_i32, %c0_i32_0 : i32, i32, i32
  }
}

</mosaic_0001>

<bundles_post_ra>
// kernel: tpu_custom_call.1
= control target key start
LH: loop header
LB: loop body
LE: loop exit
PB: predicated region body
PF: predicated region fallthrough
CT: control target
= control target key end

     0   :  { %10 = vsyncpa [#allocation3], 0  ;;  %s1482_s0 = inlined_call_operand.vmem [shape: f32[512,16], index: 0, kind: input, shape index: {}]   ;;  %s1483_s1 = inlined_call_operand.vmem [shape: bf16[16,4], index: 1, kind: input, shape index: {}]   ;;  %s1484_s2 = inlined_call_operand.vmem [shape: bf16[512,4], index: 2, kind: output, shape index: {0}]   ;;  %s1485_s3 = inlined_call_operand.hbm [shape: f32[2,1,4], index: 3, kind: output, shape index: {1}]   ;;  %s1486_s4 = inlined_call_operand.hbm [shape: f32[2,1,4], index: 4, kind: output, shape index: {2}]  }
   0x1   :  { %12 = vsyncpa [#allocation3 + $0x1], 0 }
   0x2   :  { %13 = vsyncpa [#allocation5], 0 }
   0x3   :  { %15 = vsyncpa [#allocation5 + $0x1], 0  ;;  %s1000_s15 = smov 0   ;;  %s1002_s16 = smov 0  }
   0x4   :  { %s1004_s17 = smov 0   ;;  %s1006_s18 = smov 0  }
   0x5 LB: > { %s1021_s19 = sadd.s32 4294967295, %s973_s18   ;;  %s801_s20 = sadd.s32 4294967294, %s973_s18   ;;  %s973_s18 = sphi %s1006_s18, %s1492_s18   ;;  %s969_s17 = sphi %s1004_s17, %s1491_s17   ;;  %s965_s16 = sphi %s1002_s16, %s1490_s16   ;;  %s961_s15 = sphi %s1000_s15, %s1489_s15  }
   0x6   : > { %s1025_s21 = sadd.s32 1, %s973_s18   ;;  %s101_s22 = sadd.s32 1, %s969_s17 }
   0x7   : > { %s98_s23 = ssub.s32 %s973_s18, %s1025_s21  ;;  %p111_p0 = scmp.ne.s32.totalorder %s969_s17, %s965_s16 }
   0x8   : > { %p99_p1 = scmp.eq.s32.totalorder %s98_s23, 0  ;;  %p112_p2 = scmp.eq.s32.totalorder %s1021_s19, 1 }
   0x9   : > { %p117_p3 = scmp.ne.s32.totalorder %s965_s16, %s961_s15  ;;  %p118_p4 = scmp.eq.s32.totalorder %s801_s20, 1 }
   0xa   : > { %s1036_s24 = scalar_select %p99_p1, %s969_s17, %s101_s22  }
   0xb   : > { %p1038_p5 = por %p112_p2, %p111_p0  ;;  %p1042_p6 = por %p118_p4, %p117_p3 }
   0xc   : > { %p804_p7 = scmp.ge.s32.totalorder %s973_s18, 1  ;;  %p174_p8 = scmp.lt.s32.totalorder %s973_s18, 3 }
   0xe   : > { %p175_p9 = pnand %p804_p7, %p174_p8 }
   0xf   : > { %s805_s29 = sshll.u32 (!%p175_p9), %s1021_s19, 5  ;;  %s1411_s12 = sand.u32 (!%p175_p9), 1, %s965_s16  }
  0x10   : > { %178 = sbr.rel (%p175_p9) target bundleno = 287 (0x11f), region = 28  ;;  %p209_p10 = scmp.lt.s32.totalorder (!%p175_p9), %s805_s29, 63 }
  0x11   : > { %s676_s20 = scalar_lea.hbm (!%p175_p9), %s1485_s3, %s1021_s19  ;;  %s689_s27 = scalar_lea.hbm (!%p175_p9), %s1486_s4, %s1021_s19 }
  0x12   : > { %s201_s28 = scalar_lea.vmem (!%p175_p9), [#allocation2], %s1411_s12  ;;  %s207_s5 = scalar_lea.vmem (!%p175_p9), [#allocation4], %s1411_s12 }
  0x13   : > { %s1427_s6 = sshll.u32 (!%p175_p9), %s207_s5, 4  ;;  %s660_s19 = scalar_lea.sflag (!%p175_p9), [#allocation3], %s1411_s12  ;;  %s692_s6 = int_to_ptr.vmem [resolvable:$true] %s1427_s6 }
  0x14   : > { %s899_s13 = scalar_lea.hbm (!%p175_p9), %s1485_s3, 2 }
  0x15   : > { %v831_v0 = vld [vmem:[%s1483_s1] sm:$0xff]  ;;  %s1494_s29 = smov (!%p209_p10, %s805_s29), 63  ;;  %vm277_vm0 = vcmask 130048   ;;  %vm447_vm1 = vcmask 27648   ;;  %vm480_vm2 = vcmask 31744   ;;  %vm550_vm3 = vcmask 24576  }
  0x16   : > { %333 = vmatpush.bf16.msra.mxu0 %v831_v0  ;;  %832 = vmatpush.bf16.msra.mxu1 %v831_v0  ;;  %s806_s30 = sshll.u32 %s1494_s29, 3  ;;  %s808_s8 = sshll.u32 %s1494_s29, 2 }
  0x17   : > { %833 = vmatpush.bf16.msra.mxu2 %v831_v0  ;;  %834 = vmatpush.bf16.msra.mxu3 %v831_v0  ;;  %s1058_s7 = scalar_lea.vmem %s1482_s0, %s806_s30  ;;  %s1112_s11 = scalar_lea.vmem %s1484_s2, %s808_s8 }
  0x18   : > { %v221_v1 = vld [vmem:[%s1058_s7] sm:$0xff]  ;;  %v222_v2 = vld [vmem:[%s1058_s7 + $0x8] sm:$0xff]  ;;  %v223_v13 = vld [vmem:[%s1058_s7 + $0x10] sm:$0xff]  ;;  %s1422_s29 = sshll.u32 %s201_s28, 4  ;;  %s1424_s30 = sshll.u32 %s676_s20, 4  ;;  %s679_s29 = int_to_ptr.vmem [resolvable:$true] %s1422_s29  ;;  %s681_s30 = int_to_ptr.hbm [resolvable:$true] %s1424_s30 }
  0x19   : > { %v229_v3 = vld [vmem:[%s1058_s7 + $0x40] sm:$0xff]  ;;  %v253_v4 = vpack.c.bf16 %v222_v2, %v221_v1  ;;  %v230_v5 = vld [vmem:[%s1058_s7 + $0x48] sm:$0xff]  ;;  %v224_v14 = vld [vmem:[%s1058_s7 + $0x18] sm:$0xff]  ;;  %s893_s8 = sshra.s32 %s681_s30, 4  ;;  %s894_s8 = int_to_ptr.hbm [resolvable:$true] %s893_s8 }
  0x1a   : > { %v257_v6 = vpack.c.bf16 %v230_v5, %v229_v3  ;;  %v237_v7 = vld [vmem:[%s1058_s7 + $0x80] sm:$0xff]  ;;  %v238_v8 = vld [vmem:[%s1058_s7 + $0x88] sm:$0xff]  ;;  %v231_v15 = vld [vmem:[%s1058_s7 + $0x50] sm:$0xff]  ;;  %v254_v19 = vpack.c.bf16 %v224_v14, %v223_v13  ;;  %s895_s9 = scalar_lea.hbm %s894_s8, 1  ;;  %p900_p0 = scmp.lt.s32.totalorder %s894_s8, %s1485_s3 }
  0x1b   : > { %813 = vmatmul.msk.bf16.vlgmr.msra.gmra.mxu0 %vm277_vm0, %v253_v4  ;;  %v261_v9 = vpack.c.bf16 %v238_v8, %v237_v7  ;;  %v245_v10 = vld [vmem:[%s1058_s7 + $0xc0] sm:$0xff]  ;;  %v246_v11 = vld [vmem:[%s1058_s7 + $0xc8] sm:$0xff]  ;;  %v232_v16 = vld [vmem:[%s1058_s7 + $0x58] sm:$0xff]  ;;  %p896_p11 = scmp.ne.s32.totalorder %s894_s8, %s895_s9  ;;  %p901_p1 = scmp.lt.s32.totalorder %s899_s13, %s895_s9 }
  0x1c   : > { %817 = vmatmul.msk.bf16.vlgmr.msra.gmra.mxu1 %vm277_vm0, %v257_v6  ;;  %v265_v12 = vpack.c.bf16 %v246_v11, %v245_v10  ;;  %v239_v17 = vld [vmem:[%s1058_s7 + $0x90] sm:$0xff]  ;;  %v240_v18 = vld [vmem:[%s1058_s7 + $0x98] sm:$0xff]  ;;  %v258_v20 = vpack.c.bf16 %v232_v16, %v231_v15  ;;  %v225_v25 = vld [vmem:[%s1058_s7 + $0x20] sm:$0xff] }
  0x1d   : > { %821 = vmatmul.msk.bf16.vlgmr.msra.gmra.mxu2 %vm277_vm0, %v261_v9  ;;  %v262_v21 = vpack.c.bf16 %v240_v18, %v239_v17  ;;  %v247_v22 = vld [vmem:[%s1058_s7 + $0xd0] sm:$0xff]  ;;  %v248_v23 = vld [vmem:[%s1058_s7 + $0xd8] sm:$0xff]  ;;  %v226_v26 = vld [vmem:[%s1058_s7 + $0x28] sm:$0xff]  ;;  %p897_p12 = pnand %p896_p11, %p1038_p5  ;;  %p902_p2 = por %p901_p1, %p900_p0 }
  0x1e   : > { %825 = vmatmul.msk.bf16.vlgmr.msra.gmra.mxu3 %vm277_vm0, %v265_v12  ;;  %v266_v24 = vpack.c.bf16 %v248_v23, %v247_v22  ;;  %v233_v27 = vld [vmem:[%s1058_s7 + $0x60] sm:$0xff]  ;;  %v234_v28 = vld [vmem:[%s1058_s7 + $0x68] sm:$0xff]  ;;  %v255_v31 = vpack.c.bf16 %v226_v26, %v225_v25  ;;  %v227_v37 = vld [vmem:[%s1058_s7 + $0x30] sm:$0xff] }
  0x1f   : > { %v241_v29 = vld [vmem:[%s1058_s7 + $0xa0] sm:$0xff]  ;;  %v242_v30 = vld [vmem:[%s1058_s7 + $0xa8] sm:$0xff]  ;;  %v259_v32 = vpack.c.bf16 %v234_v28, %v233_v27  ;;  %v228_v38 = vld [vmem:[%s1058_s7 + $0x38] sm:$0xff]  ;;  %p898_p13 = pneg %p897_p12 }
  0x20   : > { %v263_v33 = vpack.c.bf16 %v242_v30, %v241_v29  ;;  %v249_v34 = vld [vmem:[%s1058_s7 + $0xe0] sm:$0xff]  ;;  %v250_v35 = vld [vmem:[%s1058_s7 + $0xe8] sm:$0xff]  ;;  %v235_v39 = vld [vmem:[%s1058_s7 + $0x70] sm:$0xff]  ;;  %v256_v43 = vpack.c.bf16 %v228_v38, %v227_v37 }
  0x21   : > { %v267_v36 = vpack.c.bf16 %v250_v35, %v249_v34  ;;  %v236_v40 = vld [vmem:[%s1058_s7 + $0x78] sm:$0xff]  ;;  %v243_v41 = vld [vmem:[%s1058_s7 + $0xb0] sm:$0xff]  ;;  %p903_p3 = pnand %p902_p2, %p898_p13 }
  0x22   : > { %v244_v42 = vld [vmem:[%s1058_s7 + $0xb8] sm:$0xff]  ;;  %v260_v44 = vpack.c.bf16 %v236_v40, %v235_v39  ;;  %v251_v46 = vld [vmem:[%s1058_s7 + $0xf0] sm:$0xff] }
  0x23   : > { %v264_v45 = vpack.c.bf16 %v244_v42, %v243_v41  ;;  %v252_v47 = vld [vmem:[%s1058_s7 + $0xf8] sm:$0xff]  ;;  %s1429_s7 = sshll.u32 %s689_s27, 4  ;;  %s694_s7 = int_to_ptr.hbm [resolvable:$true] %s1429_s7 }
  0x24   : > { %v268_v48 = vpack.c.bf16 %v252_v47, %v251_v46 }
  0x2b   : > { %814 = vmatmul.msk.bf16.gmra.mxu0 %vm277_vm0, %v254_v19 }
  0x2c   : > { %818 = vmatmul.msk.bf16.gmra.mxu1 %vm277_vm0, %v258_v20 }
  0x2d   : > { %822 = vmatmul.msk.bf16.gmra.mxu2 %vm277_vm0, %v262_v21 }
  0x2e   : > { %826 = vmatmul.msk.bf16.gmra.mxu3 %vm277_vm0, %v266_v24 }
  0x3b   : > { %815 = vmatmul.msk.bf16.gmra.mxu0 %vm277_vm0, %v255_v31 }
  0x3c   : > { %819 = vmatmul.msk.bf16.gmra.mxu1 %vm277_vm0, %v259_v32 }
  0x3d   : > { %823 = vmatmul.msk.bf16.gmra.mxu2 %vm277_vm0, %v263_v33 }
  0x3e   : > { %827 = vmatmul.msk.bf16.gmra.mxu3 %vm277_vm0, %v267_v36 }
  0x4b   : > { %816 = vmatmul.msk.bf16.gmra.mxu0 %vm277_vm0, %v256_v43 }
  0x4c   : > { %820 = vmatmul.msk.bf16.gmra.mxu1 %vm277_vm0, %v260_v44 }
  0x4d   : > { %824 = vmatmul.msk.bf16.gmra.mxu2 %vm277_vm0, %v264_v45 }
  0x4e   : > { %828 = vmatmul.msk.bf16.gmra.mxu3 %vm277_vm0, %v268_v48 }
  0x98   : > { %v1114_v49 = vpop.f32.mrf.mxu0 }
  0x99   : > { %v415_v50 = vpack.c.bf16 %v1114_v49, %v1114_v49  ;;  %v1118_v51 = vpop.f32.mrf.mxu1  ;;  %v552_v28 = vmul.f32 %v1114_v49, %v1114_v49  ;;  %v481_v33 = vsel %vm480_vm2, %v1114_v49, 0.0 }
  0x9a   : > { %v423_v52 = vpack.c.bf16 %v1118_v51, %v1118_v51 }
  0x9b   : > { %448 = vst.msk [vmem:[%s1112_s11] sm:$0xf] %vm447_vm1, %v415_v50  ;;  %v584_v37 = vsel %vm480_vm2, %v552_v28, 0.0 }
  0x9c   : > { %456 = vst.msk [vmem:[%s1112_s11 + $0x20] sm:$0xf] %vm447_vm1, %v423_v52 }
  0xa0   : > { %v337_v53 = vpop.f32.mrf.mxu0  ;;  %v1126_v54 = vpop.f32.mrf.mxu2 }
  0xa1   : > { %v416_v55 = vpack.c.bf16 %v337_v53, %v337_v53  ;;  %v1128_v56 = vpop.f32.mrf.mxu1  ;;  %v431_v57 = vpack.c.bf16 %v1126_v54, %v1126_v54  ;;  %v1136_v59 = vpop.f32.mrf.mxu3  ;;  %v553_v23 = vmul.f32 %v337_v53, %v337_v53  ;;  %v482_v29 = vsel %vm480_vm2, %v337_v53, 0.0 }
  0xa2   : > { %v424_v58 = vpack.c.bf16 %v1128_v56, %v1128_v56  ;;  %v439_v60 = vpack.c.bf16 %v1136_v59, %v1136_v59  ;;  %v483_v36 = vadd.f32 %v482_v29, %v481_v33  ;;  %v561_v33 = vmul.f32 %v1128_v56, %v1128_v56 }
  0xa3   : > { %449 = vst.msk [vmem:[%s1112_s11 + $0x4] sm:$0xf] %vm447_vm1, %v416_v55  ;;  %v585_v34 = vsel %vm480_vm2, %v553_v23, 0.0 }
  0xa4   : > { %457 = vst.msk [vmem:[%s1112_s11 + $0x24] sm:$0xf] %vm447_vm1, %v424_v58  ;;  %v586_v41 = vadd.f32 %v585_v34, %v584_v37 }
  0xa5   : > { %464 = vst.msk [vmem:[%s1112_s11 + $0x40] sm:$0xf] %vm447_vm1, %v431_v57 }
  0xa6   : > { %472 = vst.msk [vmem:[%s1112_s11 + $0x60] sm:$0xf] %vm447_vm1, %v439_v60 }
  0xa8   : > { %v340_v61 = vpop.f32.mrf.mxu0  ;;  %v1146_v62 = vpop.f32.mrf.mxu2 }
  0xa9   : > { %v417_v63 = vpack.c.bf16 %v340_v61, %v340_v61  ;;  %v1148_v0 = vpop.f32.mrf.mxu1  ;;  %v432_v1 = vpack.c.bf16 %v1146_v62, %v1146_v62  ;;  %v1156_v3 = vpop.f32.mrf.mxu3  ;;  %v554_v30 = vmul.f32 %v340_v61, %v340_v61  ;;  %v484_v35 = vsel %vm480_vm2, %v340_v61, 0.0 }
  0xaa   : > { %v425_v2 = vpack.c.bf16 %v1148_v0, %v1148_v0  ;;  %v440_v4 = vpack.c.bf16 %v1156_v3, %v1156_v3  ;;  %v485_v42 = vadd.f32 %v484_v35, %v483_v36  ;;  %v562_v36 = vmul.f32 %v1148_v0, %v1148_v0 }
  0xab   : > { %450 = vst.msk [vmem:[%s1112_s11 + $0x8] sm:$0xf] %vm447_vm1, %v417_v63  ;;  %v587_v38 = vsel %vm480_vm2, %v554_v30, 0.0 }
  0xac   : > { %458 = vst.msk [vmem:[%s1112_s11 + $0x28] sm:$0xf] %vm447_vm1, %v425_v2  ;;  %v588_v52 = vadd.f32 %v587_v38, %v586_v41 }
  0xad   : > { %465 = vst.msk [vmem:[%s1112_s11 + $0x44] sm:$0xf] %vm447_vm1, %v432_v1 }
  0xae   : > { %473 = vst.msk [vmem:[%s1112_s11 + $0x64] sm:$0xf] %vm447_vm1, %v440_v4 }
  0xb0   : > { %v342_v5 = vpop.f32.mrf.mxu0  ;;  %v1166_v6 = vpop.f32.mrf.mxu2 }
  0xb1   : > { %v418_v7 = vpack.c.bf16 %v342_v5, %v342_v5  ;;  %v1168_v8 = vpop.f32.mrf.mxu1  ;;  %v433_v9 = vpack.c.bf16 %v1166_v6, %v1166_v6  ;;  %v1176_v11 = vpop.f32.mrf.mxu3  ;;  %v555_v32 = vmul.f32 %v342_v5, %v342_v5  ;;  %v486_v39 = vsel %vm480_vm2, %v342_v5, 0.0 }
  0xb2   : > { %v426_v10 = vpack.c.bf16 %v1168_v8, %v1168_v8  ;;  %v441_v18 = vpack.c.bf16 %v1176_v11, %v1176_v11  ;;  %v487_v53 = vadd.f32 %v486_v39, %v485_v42  ;;  %v601_v42 = vsel %vm480_vm2, %v561_v33, 0.0 }
  0xb3   : > { %451 = vst.msk [vmem:[%s1112_s11 + $0xc] sm:$0xf] %vm447_vm1, %v418_v7  ;;  %v589_v43 = vsel %vm480_vm2, %v555_v32, 0.0  ;;  %v496_v32 = vsel %vm480_vm2, %v1118_v51, 0.0 }
  0xb4   : > { %459 = vst.msk [vmem:[%s1112_s11 + $0x2c] sm:$0xf] %vm447_vm1, %v426_v10  ;;  %v590_v1 = vadd.f32 %v589_v43, %v588_v52  ;;  %v500_v43 = vsel %vm480_vm2, %v1148_v0, 0.0 }
  0xb5   : > { %466 = vst.msk [vmem:[%s1112_s11 + $0x48] sm:$0xf] %vm447_vm1, %v433_v9 }
  0xb6   : > { %474 = vst.msk [vmem:[%s1112_s11 + $0x68] sm:$0xf] %vm447_vm1, %v441_v18 }
  0xb8   : > { %v345_v12 = vpop.f32.mrf.mxu0  ;;  %v1182_v13 = vpop.f32.mrf.mxu2 }
  0xb9   : > { %v419_v14 = vpack.c.bf16 %v345_v12, %v345_v12  ;;  %v1184_v15 = vpop.f32.mrf.mxu1  ;;  %v434_v16 = vpack.c.bf16 %v1182_v13, %v1182_v13  ;;  %v1194_v19 = vpop.f32.mrf.mxu3  ;;  %v556_v40 = vmul.f32 %v345_v12, %v345_v12  ;;  %v488_v46 = vsel %vm480_vm2, %v345_v12, 0.0 }
  0xba   : > { %v427_v17 = vpack.c.bf16 %v1184_v15, %v1184_v15  ;;  %v442_v20 = vpack.c.bf16 %v1194_v19, %v1194_v19  ;;  %v489_v2 = vadd.f32 %v488_v46, %v487_v53  ;;  %v603_v46 = vsel %vm480_vm2, %v562_v36, 0.0 }
  0xbb   : > { %452 = vst.msk [vmem:[%s1112_s11 + $0x10] sm:$0xf] %vm447_vm1, %v419_v14  ;;  %v591_v57 = vsel %vm480_vm2, %v556_v40, 0.0  ;;  %v560_v14 = vmul.f32 %v1118_v51, %v1118_v51  ;;  %v498_v51 = vsel %vm480_vm2, %v1128_v56, 0.0  ;;  %v502_v56 = vsel %vm480_vm2, %v1168_v8, 0.0 }
  0xbc   : > { %460 = vst.msk [vmem:[%s1112_s11 + $0x30] sm:$0xf] %vm447_vm1, %v427_v17  ;;  %v592_v9 = vadd.f32 %v591_v57, %v590_v1  ;;  %v564_v52 = vmul.f32 %v1184_v15, %v1184_v15 }
  0xbd   : > { %467 = vst.msk [vmem:[%s1112_s11 + $0x4c] sm:$0xf] %vm447_vm1, %v434_v16  ;;  %v599_v39 = vsel %vm480_vm2, %v560_v14, 0.0 }
  0xbe   : > { %475 = vst.msk [vmem:[%s1112_s11 + $0x6c] sm:$0xf] %vm447_vm1, %v442_v20 }
  0xc0   : > { %v347_v21 = vpop.f32.mrf.mxu0  ;;  %v1206_v22 = vpop.f32.mrf.mxu2 }
  0xc1   : > { %v420_v24 = vpack.c.bf16 %v347_v21, %v347_v21  ;;  %v1208_v25 = vpop.f32.mrf.mxu1  ;;  %v435_v26 = vpack.c.bf16 %v1206_v22, %v1206_v22  ;;  %v1219_v31 = vpop.f32.mrf.mxu3  ;;  %v557_v47 = vmul.f32 %v347_v21, %v347_v21  ;;  %v490_v58 = vsel %vm480_vm2, %v347_v21, 0.0 }
  0xc2   : > { %v428_v27 = vpack.c.bf16 %v1208_v25, %v1208_v25  ;;  %v443_v61 = vpack.c.bf16 %v1219_v31, %v1219_v31  ;;  %v491_v10 = vadd.f32 %v490_v58, %v489_v2 }
  0xc3   : > { %453 = vst.msk [vmem:[%s1112_s11 + $0x14] sm:$0xf] %vm447_vm1, %v420_v24  ;;  %v593_v4 = vsel %vm480_vm2, %v557_v47, 0.0 }
  0xc4   : > { %461 = vst.msk [vmem:[%s1112_s11 + $0x34] sm:$0xf] %vm447_vm1, %v428_v27  ;;  %v594_v16 = vadd.f32 %v593_v4, %v592_v9 }
  0xc5   : > { %468 = vst.msk [vmem:[%s1112_s11 + $0x50] sm:$0xf] %vm447_vm1, %v435_v26 }
  0xc6   : > { %476 = vst.msk [vmem:[%s1112_s11 + $0x70] sm:$0xf] %vm447_vm1, %v443_v61 }
  0xc8   : > { %v350_v44 = vpop.f32.mrf.mxu0  ;;  %v1233_v45 = vpop.f32.mrf.mxu2 }
  0xc9   : > { %v421_v48 = vpack.c.bf16 %v350_v44, %v350_v44  ;;  %v1236_v49 = vpop.f32.mrf.mxu1  ;;  %v436_v50 = vpack.c.bf16 %v1233_v45, %v1233_v45  ;;  %v558_v60 = vmul.f32 %v350_v44, %v350_v44  ;;  %v1248_v63 = vpop.f32.mrf.mxu3  ;;  %v492_v5 = vsel %vm480_vm2, %v350_v44, 0.0 }
  0xca   : > { %v429_v55 = vpack.c.bf16 %v1236_v49, %v1236_v49  ;;  %v444_v7 = vpack.c.bf16 %v1248_v63, %v1248_v63  ;;  %v493_v17 = vadd.f32 %v492_v5, %v491_v10  ;;  %v563_v44 = vmul.f32 %v1168_v8, %v1168_v8 }
  0xcb   : > { %454 = vst.msk [vmem:[%s1112_s11 + $0x18] sm:$0xf] %vm447_vm1, %v421_v48  ;;  %v595_v12 = vsel %vm480_vm2, %v558_v60, 0.0  ;;  %v504_v60 = vsel %vm480_vm2, %v1184_v15, 0.0  ;;  %v565_v8 = vmul.f32 %v1208_v25, %v1208_v25  ;;  %v607_v5 = vsel %vm480_vm2, %v564_v52, 0.0 }
  0xcc   : > { %462 = vst.msk [vmem:[%s1112_s11 + $0x38] sm:$0xf] %vm447_vm1, %v429_v55  ;;  %v596_v28 = vadd.f32 %v595_v12, %v594_v16  ;;  %v605_v58 = vsel %vm480_vm2, %v563_v44, 0.0  ;;  %v566_v15 = vmul.f32 %v1236_v49, %v1236_v49  ;;  %v508_v14 = vsel %vm480_vm2, %v1236_v49, 0.0 }
  0xcd   : > { %469 = vst.msk [vmem:[%s1112_s11 + $0x54] sm:$0xf] %vm447_vm1, %v436_v50  ;;  %v609_v12 = vsel %vm480_vm2, %v565_v8, 0.0 }
  0xce   : > { %477 = vst.msk [vmem:[%s1112_s11 + $0x74] sm:$0xf] %vm447_vm1, %v444_v7  ;;  %v506_v7 = vsel %vm480_vm2, %v1208_v25, 0.0  ;;  %v611_v25 = vsel %vm480_vm2, %v566_v15, 0.0 }
  0xd0   : > { %v352_v18 = vpop.f32.mrf.mxu0  ;;  %v1265_v20 = vpop.f32.mrf.mxu2 }
  0xd1   : > { %v422_v21 = vpack.c.bf16 %v352_v18, %v352_v18  ;;  %v494_v23 = vsel %vm480_vm2, %v352_v18, 0.0  ;;  %v559_v24 = vmul.f32 %v352_v18, %v352_v18  ;;  %v372_v26 = vpop.f32.mrf.mxu1  ;;  %v437_v27 = vpack.c.bf16 %v1265_v20, %v1265_v20  ;;  %v1277_v35 = vpop.f32.mrf.mxu3 }
  0xd2   : > { %v495_v29 = vadd.f32 %v494_v23, %v493_v17  ;;  %v430_v30 = vpack.c.bf16 %v372_v26, %v372_v26  ;;  %v445_v0 = vpack.c.bf16 %v1277_v35, %v1277_v35  ;;  %v567_v16 = vmul.f32 %v372_v26, %v372_v26 }
  0xd3   : > { %455 = vst.msk [vmem:[%s1112_s11 + $0x1c] sm:$0xf] %vm447_vm1, %v422_v21  ;;  %v597_v34 = vsel %vm480_vm2, %v559_v24, 0.0  ;;  %v568_v21 = vmul.f32 %v1126_v54, %v1126_v54  ;;  %v510_v23 = vsel %vm480_vm2, %v372_v26, 0.0  ;;  %v570_v26 = vmul.f32 %v1166_v6, %v1166_v6 }
  0xd4   : > { %v497_v37 = vadd.f32 %v496_v32, %v495_v29  ;;  %v598_v38 = vadd.f32 %v597_v34, %v596_v28  ;;  %463 = vst.msk [vmem:[%s1112_s11 + $0x3c] sm:$0xf] %vm447_vm1, %v430_v30  ;;  %v512_v28 = vsel %vm480_vm2, %v1126_v54, 0.0  ;;  %v569_v29 = vmul.f32 %v1146_v62, %v1146_v62 }
  0xd5   : > { %470 = vst.msk [vmem:[%s1112_s11 + $0x58] sm:$0xf] %vm447_vm1, %v437_v27  ;;  %v613_v49 = vsel %vm480_vm2, %v567_v16, 0.0  ;;  %v615_v33 = vsel %vm480_vm2, %v568_v21, 0.0  ;;  %v514_v34 = vsel %vm480_vm2, %v1146_v62, 0.0  ;;  %v516_v54 = vsel %vm480_vm2, %v1166_v6, 0.0 }
  0xd6   : > { %v499_v40 = vadd.f32 %v498_v51, %v497_v37  ;;  %v600_v41 = vadd.f32 %v599_v39, %v598_v38  ;;  %478 = vst.msk [vmem:[%s1112_s11 + $0x78] sm:$0xf] %vm447_vm1, %v445_v0  ;;  %v617_v38 = vsel %vm480_vm2, %v569_v29, 0.0  ;;  %v571_v39 = vmul.f32 %v1182_v13, %v1182_v13 }
  0xd7   : > { %v518_v62 = vsel %vm480_vm2, %v1182_v13, 0.0  ;;  %v520_v6 = vsel %vm480_vm2, %v1206_v22, 0.0  ;;  %v522_v13 = vsel %vm480_vm2, %v1233_v45, 0.0  ;;  %v579_v21 = vmul.f32 %v1194_v19, %v1194_v19 }
  0xd8   : > { %v501_v47 = vadd.f32 %v500_v43, %v499_v40  ;;  %v602_v48 = vadd.f32 %v601_v42, %v600_v41  ;;  %v1294_v50 = vpop.f32.mrf.mxu2  ;;  %v619_v41 = vsel %vm480_vm2, %v570_v26, 0.0  ;;  %v572_v42 = vmul.f32 %v1206_v22, %v1206_v22 }
  0xd9   : > { %v438_v53 = vpack.c.bf16 %v1294_v50, %v1294_v50  ;;  %v1311_v61 = vpop.f32.mrf.mxu3  ;;  %v524_v22 = vsel %vm480_vm2, %v1265_v20, 0.0  ;;  %v582_v26 = vmul.f32 %v1277_v35, %v1277_v35 }
  0xda   : > { %v604_v55 = vadd.f32 %v603_v46, %v602_v48  ;;  %v503_v57 = vadd.f32 %v502_v56, %v501_v47  ;;  %v446_v4 = vpack.c.bf16 %v1311_v61, %v1311_v61  ;;  %v621_v46 = vsel %vm480_vm2, %v571_v39, 0.0 }
  0xdb   : > { %471 = vst.msk [vmem:[%s1112_s11 + $0x5c] sm:$0xf] %vm447_vm1, %v438_v53  ;;  %v573_v47 = vmul.f32 %v1233_v45, %v1233_v45  ;;  %v623_v52 = vsel %vm480_vm2, %v572_v42, 0.0  ;;  %v574_v53 = vmul.f32 %v1265_v20, %v1265_v20  ;;  %v577_v20 = vmul.f32 %v1156_v3, %v1156_v3 }
  0xdc   : > { %v505_v1 = vadd.f32 %v504_v60, %v503_v57  ;;  %v606_v2 = vadd.f32 %v605_v58, %v604_v55  ;;  %479 = vst.msk [vmem:[%s1112_s11 + $0x7c] sm:$0xf] %vm447_vm1, %v446_v4  ;;  %v575_v58 = vmul.f32 %v1294_v50, %v1294_v50 }
  0xdd   : > { %v625_v57 = vsel %vm480_vm2, %v573_v47, 0.0  ;;  %v627_v45 = vsel %vm480_vm2, %v574_v53, 0.0 }
  0xde   : > { %v507_v9 = vadd.f32 %v506_v7, %v505_v1  ;;  %v608_v10 = vadd.f32 %v607_v5, %v606_v2  ;;  %v576_v1 = vmul.f32 %v1136_v59, %v1136_v59  ;;  %v526_v2 = vsel %vm480_vm2, %v1294_v50, 0.0 }
  0xdf   : > { %v528_v7 = vsel %vm480_vm2, %v1136_v59, 0.0  ;;  %v629_v15 = vsel %vm480_vm2, %v575_v58, 0.0  ;;  %v578_v50 = vmul.f32 %v1176_v11, %v1176_v11  ;;  %v532_v59 = vsel %vm480_vm2, %v1176_v11, 0.0 }
  0xe0   : > { %v509_v17 = vadd.f32 %v508_v14, %v507_v9  ;;  %v610_v18 = vadd.f32 %v609_v12, %v608_v10  ;;  %v631_v12 = vsel %vm480_vm2, %v576_v1, 0.0  ;;  %v530_v14 = vsel %vm480_vm2, %v1156_v3, 0.0 }
  0xe1   : > { %v534_v3 = vsel %vm480_vm2, %v1194_v19, 0.0  ;;  %v536_v11 = vsel %vm480_vm2, %v1219_v31, 0.0  ;;  %v538_v19 = vsel %vm480_vm2, %v1248_v63, 0.0 }
  0xe2   : > { %v612_v24 = vadd.f32 %v611_v25, %v610_v18  ;;  %v511_v27 = vadd.f32 %v510_v23, %v509_v17  ;;  %v633_v18 = vsel %vm480_vm2, %v577_v20, 0.0 }
  0xe4   : > { %v513_v30 = vadd.f32 %v512_v28, %v511_v27  ;;  %v614_v32 = vadd.f32 %v613_v49, %v612_v24  ;;  %v635_v24 = vsel %vm480_vm2, %v578_v50, 0.0  ;;  %v580_v27 = vmul.f32 %v1219_v31, %v1219_v31 }
  0xe5   : > { %v637_v49 = vsel %vm480_vm2, %v579_v21, 0.0  ;;  %v540_v31 = vsel %vm480_vm2, %v1277_v35, 0.0 }
  0xe6   : > { %v515_v36 = vadd.f32 %v514_v34, %v513_v30  ;;  %v616_v37 = vadd.f32 %v615_v33, %v614_v32  ;;  %v581_v30 = vmul.f32 %v1248_v63, %v1248_v63  ;;  %v639_v34 = vsel %vm480_vm2, %v580_v27, 0.0 }
  0xe7   : > { %v643_v63 = vsel %vm480_vm2, %v582_v26, 0.0 }
  0xe8   : > { %v517_v51 = vadd.f32 %v516_v54, %v515_v36  ;;  %v618_v40 = vadd.f32 %v617_v38, %v616_v37  ;;  %v641_v38 = vsel %vm480_vm2, %v581_v30, 0.0  ;;  %v583_v54 = vmul.f32 %v1311_v61, %v1311_v61 }
  0xea   : > { %v620_v43 = vadd.f32 %v619_v41, %v618_v40  ;;  %v519_v44 = vadd.f32 %v518_v62, %v517_v51  ;;  %v542_v40 = vsel %vm480_vm2, %v1311_v61, 0.0  ;;  %v645_v42 = vsel %vm480_vm2, %v583_v54, 0.0 }
  0xec   : > { %v521_v48 = vadd.f32 %v520_v6, %v519_v44  ;;  %v622_v56 = vadd.f32 %v621_v46, %v620_v43 }
  0xee   : > { %v523_v0 = vadd.f32 %v522_v13, %v521_v48  ;;  %v624_v55 = vadd.f32 %v623_v52, %v622_v56 }
  0xf0   : > { %v626_v60 = vadd.f32 %v625_v57, %v624_v55  ;;  %v525_v8 = vadd.f32 %v524_v22, %v523_v0 }
  0xf2   : > { %v628_v4 = vadd.f32 %v627_v45, %v626_v60  ;;  %v527_v5 = vadd.f32 %v526_v2, %v525_v8 }
  0xf4   : > { %v529_v9 = vadd.f32 %v528_v7, %v527_v5  ;;  %v630_v10 = vadd.f32 %v629_v15, %v628_v4 }
  0xf6   : > { %v531_v16 = vadd.f32 %v530_v14, %v529_v9  ;;  %v632_v17 = vadd.f32 %v631_v12, %v630_v10 }
  0xf8   : > { %v533_v25 = vadd.f32 %v532_v59, %v531_v16  ;;  %v634_v23 = vadd.f32 %v633_v18, %v632_v17 }
  0xfa   : > { %v636_v28 = vadd.f32 %v635_v24, %v634_v23  ;;  %v535_v29 = vadd.f32 %v534_v3, %v533_v25 }
  0xfc   : > { %v537_v32 = vadd.f32 %v536_v11, %v535_v29  ;;  %v638_v33 = vadd.f32 %v637_v49, %v636_v28 }
  0xfe   : > { %v539_v36 = vadd.f32 %v538_v19, %v537_v32  ;;  %v640_v37 = vadd.f32 %v639_v34, %v638_v33 }
 0x100   : > { %v642_v39 = vadd.f32 %v641_v38, %v640_v37  ;;  %v541_v51 = vadd.f32 %v540_v31, %v539_v36 }
 0x102   : > { %v644_v41 = vadd.f32 %v643_v63, %v642_v39  ;;  %v543_v62 = vadd.f32 %v542_v40, %v541_v51 }
 0x104   : > { %v544_v43 = vrot.slane %v543_v62, 4  ;;  %v646_v44 = vadd.f32 %v645_v42, %v644_v41 }
 0x106   : > { %v545_v35 = vadd.f32 %v544_v43, %v543_v62  ;;  %v647_v46 = vrot.slane %v646_v44, 4 }
 0x108   : > { %v546_v6 = vrot.slane %v545_v35, 2  ;;  %v648_v47 = vadd.f32 %v647_v46, %v646_v44 }
 0x10a   : > { %v547_v48 = vadd.f32 %v546_v6, %v545_v35  ;;  %v649_v61 = vrot.slane %v648_v47, 2 }
 0x10c   : > { %v548_v56 = vrot.slane %v547_v48, 1  ;;  %v650_v52 = vadd.f32 %v649_v61, %v648_v47 }
 0x10e   : > { %v549_v13 = vadd.f32 %v548_v56, %v547_v48  ;;  %v651_v53 = vrot.slane %v650_v52, 1 }
 0x110   : > { %551 = vst.msk [vmem:[%s201_s28] sm:$0x1] %vm550_vm3, %v549_v13  ;;  %v652_v0 = vadd.f32 %v651_v53, %v650_v52 }
 0x111   : > { %906 = shalt.err (!%p903_p3)
}
 0x112   : > { %835 = dma.vmem_to_hbm [thread:$0]  (%p1038_p5), %s679_s29, 16, %s681_s30, %s660_s19   ;;  %653 = vst.msk [vmem:[%s207_s5] sm:$0x1] %vm550_vm3, %v652_v0 }
 0x113   : > { %s664_s22 = scalar_lea.sflag [#allocation5], %s1411_s12  ;;  %s921_s23 = sshra.s32 %s694_s7, 4  ;;  %s922_s23 = int_to_ptr.hbm [resolvable:$true] %s921_s23 }
 0x114   : > { %s923_s27 = scalar_lea.hbm %s922_s23, 1  ;;  %s927_s9 = scalar_lea.hbm %s1486_s4, 2 }
 0x115   : > { %p924_p4 = scmp.ne.s32.totalorder %s922_s23, %s923_s27  ;;  %p928_p9 = scmp.lt.s32.totalorder %s922_s23, %s1486_s4 }
 0x116   : > { %p929_p10 = scmp.lt.s32.totalorder %s927_s9, %s923_s27 }
 0x117   : > { %p925_p7 = pnand %p924_p4, %p1038_p5 }
 0x118   : > { %p930_p11 = por %p929_p10, %p928_p9 }
 0x119   : > { %p926_p8 = pneg %p925_p7 }
 0x11b   : > { %p931_p12 = pnand %p930_p11, %p926_p8 }
 0x11d   : > { %934 = shalt.err (!%p931_p12)
}
 0x11e   : > { %836 = dma.vmem_to_hbm [thread:$0]  (%p1038_p5), %s692_s6, 16, %s694_s7, %s664_s22  }
 0x11f PF: > { %p846_p13 = scmp.ge.s32.totalorder %s973_s18, 2  ;;  %s713_s12 = sand.u32 1, %s961_s15  }
 0x120   : > { %s714_s29 = scalar_lea.sflag [#allocation3], %s713_s12 }
 0x121   : > { %p840_p0 = pnand %p846_p13, %p1042_p6 }
 0x123   : > { %p841_p1 = pneg %p840_p0 }
 0x125   : > { %952 = dma.done.wait (%p841_p1), %s714_s29, 16  }
 0x126   : > { %954 = vsyncadd (%p841_p1), %s714_s29, 4294967280  ;;  %s723_s30 = scalar_lea.sflag [#allocation5], %s713_s12 }
 0x127   : > { %956 = dma.done.wait (%p841_p1), %s723_s30, 16  }
 0x128   : > { %958 = vsyncadd (%p841_p1), %s723_s30, 4294967280  ;;  %p18_p5 = scmp.ge.s32.totalorder %s1025_s21, 4   ;;  %s1489_s15 = smov %s965_s16 }
 0x129   : > { %s1490_s16 = smov %s969_s17  ;;  %s1491_s17 = smov %s1036_s24 }
 0x12a   : > { %s1492_s18 = smov %s1025_s21  ;;  %20 = sbr.rel (!%p18_p5) target bundleno = 5 (0x5), region = 92 }
 0x12f   :  { %728 = vsyncpa [#allocation3], 1 }
 0x130   :  { %730 = vsyncpa [#allocation3 + $0x1], 1 }
 0x131   :  { %731 = vsyncpa [#allocation5], 1 }
 0x132   :  { %733 = vsyncpa [#allocation5 + $0x1], 1 }

</bundles_post_ra>
